<compile_context>
chip_gen: v7x
topology: tpu7x:2x2x1
jax: 0.10.0
libtpu: 0.0.40
codegen_flags: <defaults>
</compile_context>

<pallas_src>
import math

import jax
import jax.numpy as jnp
from jax.experimental import pallas as pl
from jax.experimental.pallas import tpu as pltpu

ACTIONS = [0, 1, 2, 3, 6, 8, 9]

LANE = 128  # TPU lane width; hidden/output dims are padded to this.


def _round_up(x, m):
    return (x + m - 1) // m * m


# ---------------------------------------------------------------------------
# Parameter packing: one contiguous (rows, 128) slab, every segment starts on
# an 8-row (sublane-tile) boundary so in-kernel static slices are cheap.
# ---------------------------------------------------------------------------
def pack_params(w1, b1, w2, b2, w3, b3):
    o, h = w1.shape
    a = w3.shape[1]

    segments = []
    offsets = {}
    cur = 0

    def add(name, mat, nrows):
        nonlocal cur
        buf = jnp.zeros((nrows, LANE), jnp.float32)
        buf = buf.at[: mat.shape[0], : mat.shape[1]].set(mat.astype(jnp.float32))
        offsets[name] = cur
        segments.append(buf)
        cur += nrows

    add("w1", w1, _round_up(o, 8))      # (o, h)  -> (o_pad, 128)
    add("b1", b1, 8)                    # (1, h)  -> (8, 128)
    add("w2", w2, LANE)                 # (h, h)  -> (128, 128), zero-padded
    add("b2", b2, 8)
    add("w3", w3, LANE)                 # (h, a)  -> (128, 128), zero-padded
    # Output-layer bias: padded lanes get -1e30 so their softmax prob is exactly 0.
    b3_pad = jnp.full((1, LANE), -1e30, jnp.float32).at[:, :a].set(
        b3.astype(jnp.float32))
    add("b3", b3_pad, 8)

    slab = jnp.concatenate(segments, axis=0)   # (296, 128) for o=16
    return slab, offsets, dict(o=o, h=h, a=a)


# ---------------------------------------------------------------------------
# Kernel (one batch tile per grid step; weight slab resident in VMEM).
# ---------------------------------------------------------------------------
def make_kernel(offsets, o):
    ow1, ob1 = offsets["w1"], offsets["b1"]
    ow2, ob2 = offsets["w2"], offsets["b2"]
    ow3, ob3 = offsets["w3"], offsets["b3"]

    def kernel(x_ref, p_ref, out_ref):
        x = x_ref[...]                                   # (TB, o)

        w1 = p_ref[ow1:ow1 + o, :]                       # (o, 128)
        b1 = p_ref[ob1:ob1 + 1, :]                       # (1, 128)
        w2 = p_ref[ow2:ow2 + LANE, :]                    # (128, 128)
        b2 = p_ref[ob2:ob2 + 1, :]
        w3 = p_ref[ow3:ow3 + LANE, :]                    # (128, 128)
        b3 = p_ref[ob3:ob3 + 1, :]                       # padded lanes = -1e30

        h1 = jnp.tanh(jnp.dot(x, w1, preferred_element_type=jnp.float32) + b1)
        h2 = jnp.tanh(jnp.dot(h1, w2, preferred_element_type=jnp.float32) + b2)
        logits = jnp.dot(h2, w3, preferred_element_type=jnp.float32) + b3

        # numerically stable softmax over the (lane-dense, padded) last axis
        m = jnp.max(logits, axis=-1, keepdims=True)
        e = jnp.exp(logits - m)                          # padded lanes -> exp(-huge) = 0
        denom = jnp.sum(e, axis=-1, keepdims=True)
        out_ref[...] = (e * pl.reciprocal(denom, approx=True)).astype(out_ref.dtype)

    return kernel


# ---------------------------------------------------------------------------
# Wrapper: pads batch to a tile multiple, runs the grid, slices the real output.
# ---------------------------------------------------------------------------
def softmax_actor_forward(x, packed, *, block_rows=256):
    slab, offsets, dims = packed
    o, a = dims["o"], dims["a"]
    batch = x.shape[0]

    # Batch tile: one tile for small batches, fixed tile (>=256 rows) otherwise.
    tb = min(block_rows, _round_up(max(batch, 8), 8))
    batch_pad = _round_up(batch, tb)
    if batch_pad != batch:
        x = jnp.pad(x, ((0, batch_pad - batch), (0, 0)))
    grid = (pl.cdiv(batch_pad, tb),)

    kernel = make_kernel(offsets, o)

    # TODO(synk): for rollout-scale batches, cast x / slab to bfloat16 (keep f32
    # accumulation) to halve DMA bytes; kept f32 here for exactness of the demo.
    flops = 2 * batch_pad * (o * LANE + LANE * LANE + LANE * LANE)
    cost = pl.CostEstimate(
        flops=int(flops),
        transcendentals=int(batch_pad * (3 * LANE + 1)),   # 2x tanh + exp + recip
        bytes_accessed=int(4 * (x.size + slab.size + batch_pad * LANE)),
    )

    out = pl.pallas_call(
        kernel,
        out_shape=jax.ShapeDtypeStruct((batch_pad, LANE), jnp.float32),
        grid_spec=pltpu.PrefetchScalarGridSpec(
            num_scalar_prefetch=0,
            grid=grid,
            in_specs=[
                pl.BlockSpec((tb, o), lambda i: (i, 0)),        # batch tile
                pl.BlockSpec(slab.shape, lambda i: (0, 0)),     # weights: resident
            ],
            out_specs=pl.BlockSpec((tb, LANE), lambda i: (i, 0)),
        ),
        compiler_params=pltpu.CompilerParams(
            dimension_semantics=("parallel",)),                 # 2 TCs on v7x
        cost_estimate=cost,
    )(x, slab)

    return out[:batch, :a]


# ---------------------------------------------------------------------------
# Init (mirrors the PyTorch module) + pure-JAX reference.
# ---------------------------------------------------------------------------
def init_params(key, o_size, h_size, a_size):
    k1, k2, k3, k4 = jax.random.split(key, 4)

    def xavier_uniform(k, fan_in, fan_out, gain):
        bound = gain * math.sqrt(6.0 / (fan_in + fan_out))
        # stored as (in, out) == transpose of PyTorch's (out, in) weight
        return jax.random.uniform(k, (fan_in, fan_out), jnp.float32, -bound, bound)

    gain_tanh = 5.0 / 3.0  # torch.nn.init.calculate_gain('tanh')

    w1 = xavier_uniform(k1, o_size, h_size, gain_tanh)
    b1 = jnp.zeros((1, h_size), jnp.float32)
    w2 = xavier_uniform(k2, h_size, h_size, gain_tanh)
    b2 = jnp.zeros((1, h_size), jnp.float32)

    # output layer: PyTorch default nn.Linear init: U(-1/sqrt(in), 1/sqrt(in))
    bound = 1.0 / math.sqrt(h_size)
    w3 = jax.random.uniform(k3, (h_size, a_size), jnp.float32, -bound, bound)
    b3 = jax.random.uniform(k4, (1, a_size), jnp.float32, -bound, bound)

    return w1, b1, w2, b2, w3, b3


def reference_forward(x, params):
    w1, b1, w2, b2, w3, b3 = params
    h1 = jnp.tanh(x @ w1 + b1)
    h2 = jnp.tanh(h1 @ w2 + b2)
    logits = h2 @ w3 + b3
    return jax.nn.softmax(logits, axis=-1)


if __name__ == "__main__":
    key = jax.random.PRNGKey(0)
    k_param, k_x, k_x2 = jax.random.split(key, 3)

    o_size = 16            # observation size
    h_size = 32            # hidden size
    a_size = len(ACTIONS)  # 7 discrete actions

    params = init_params(k_param, o_size, h_size, a_size)
    packed = pack_params(*params)

    # --- small case (single grid step) ---
    batch = 8
    x = jax.random.normal(k_x, (batch, o_size), jnp.float32)
    probs = jax.block_until_ready(softmax_actor_forward(x, packed))
    ref = reference_forward(x, params)
    assert probs.shape == (batch, a_size)
    # approx reciprocal -> slightly relaxed tolerances
    assert jnp.allclose(jnp.sum(probs, axis=-1), 1.0, atol=3e-3)
    assert jnp.allclose(probs, ref, atol=3e-3, rtol=3e-3)

    # --- larger batch exercising the grid + batch padding path ---
    batch2 = 1000
    x2 = jax.random.normal(k_x2, (batch2, o_size), jnp.float32)
    probs2 = jax.block_until_ready(softmax_actor_forward(x2, packed))
    ref2 = reference_forward(x2, params)
    assert probs2.shape == (batch2, a_size)
    assert jnp.allclose(jnp.sum(probs2, axis=-1), 1.0, atol=3e-3)
    assert jnp.allclose(probs2, ref2, atol=3e-3, rtol=3e-3)

    # TODO(synk): get_action's multinomial sampling / action filtering is host-side
    # control logic, not part of the tensor forward pass, so it is not in the kernel.

    print("KERNEL_OK")
</pallas_src>

<mosaic_0001>
module attributes {stable_mosaic.version = 11 : i64} {
  func.func @kernel(%arg0: i32, %arg1: memref<8x16xf32, #tpu.memory_space<vmem>>, %arg2: memref<296x128xf32, #tpu.memory_space<vmem>>, %arg3: memref<8x128xf32, #tpu.memory_space<vmem>>) attributes {dimension_semantics = [#tpu.dimension_semantics<parallel>], iteration_bounds = array<i64: 1>, scalar_prefetch = 0 : i64, scratch_operands = 0 : i64, tpu.core_type = #tpu.core_type<tc>, window_params = [{transform_indices = @transform_0, window_bounds = array<i64: 8, 16>}, {pipeline_mode = #tpu.pipeline_mode<synchronous>, transform_indices = @transform_1, window_bounds = array<i64: 296, 128>}, {transform_indices = @transform_2, window_bounds = array<i64: 8, 128>}]} {
    %c0 = arith.constant 0 : index
    %c0_0 = arith.constant 0 : index
    %0 = vector.load %arg1[%c0, %c0_0] : memref<8x16xf32, #tpu.memory_space<vmem>>, vector<8x16xf32>
    %c0_1 = arith.constant 0 : index
    %c0_2 = arith.constant 0 : index
    %1 = vector.load %arg2[%c0_1, %c0_2] : memref<296x128xf32, #tpu.memory_space<vmem>>, vector<16x128xf32>
    %c16 = arith.constant 16 : index
    %c0_3 = arith.constant 0 : index
    %2 = vector.load %arg2[%c16, %c0_3] : memref<296x128xf32, #tpu.memory_space<vmem>>, vector<1x128xf32>
    %c24 = arith.constant 24 : index
    %c0_4 = arith.constant 0 : index
    %3 = vector.load %arg2[%c24, %c0_4] : memref<296x128xf32, #tpu.memory_space<vmem>>, vector<128x128xf32>
    %c152 = arith.constant 152 : index
    %c0_5 = arith.constant 0 : index
    %4 = vector.load %arg2[%c152, %c0_5] : memref<296x128xf32, #tpu.memory_space<vmem>>, vector<1x128xf32>
    %c160 = arith.constant 160 : index
    %c0_6 = arith.constant 0 : index
    %5 = vector.load %arg2[%c160, %c0_6] : memref<296x128xf32, #tpu.memory_space<vmem>>, vector<128x128xf32>
    %c288 = arith.constant 288 : index
    %c0_7 = arith.constant 0 : index
    %6 = vector.load %arg2[%c288, %c0_7] : memref<296x128xf32, #tpu.memory_space<vmem>>, vector<1x128xf32>
    %cst = arith.constant dense<0.000000e+00> : vector<8x128xf32>
    %7 = tpu.matmul %0, %1, %cst {dimension_numbers = #tpu.dot_dimension_numbers<[1], [0], [0], [1], [0, 0, 1, 1], [], []>} : vector<8x16xf32>, vector<16x128xf32>, vector<8x128xf32> -> vector<8x128xf32>
    %8 = vector.broadcast %2 : vector<1x128xf32> to vector<8x128xf32>
    %9 = arith.addf %7, %8 : vector<8x128xf32>
    %10 = math.tanh %9 : vector<8x128xf32>
    %cst_8 = arith.constant dense<0.000000e+00> : vector<8x128xf32>
    %11 = tpu.matmul %10, %3, %cst_8 {dimension_numbers = #tpu.dot_dimension_numbers<[1], [0], [0], [1], [0, 0, 1, 1], [], []>} : vector<8x128xf32>, vector<128x128xf32>, vector<8x128xf32> -> vector<8x128xf32>
    %12 = vector.broadcast %4 : vector<1x128xf32> to vector<8x128xf32>
    %13 = arith.addf %11, %12 : vector<8x128xf32>
    %14 = math.tanh %13 : vector<8x128xf32>
    %cst_9 = arith.constant dense<0.000000e+00> : vector<8x128xf32>
    %15 = tpu.matmul %14, %5, %cst_9 {dimension_numbers = #tpu.dot_dimension_numbers<[1], [0], [0], [1], [0, 0, 1, 1], [], []>} : vector<8x128xf32>, vector<128x128xf32>, vector<8x128xf32> -> vector<8x128xf32>
    %16 = vector.broadcast %6 : vector<1x128xf32> to vector<8x128xf32>
    %17 = arith.addf %15, %16 : vector<8x128xf32>
    %cst_10 = arith.constant dense<0xFF800000> : vector<8xf32>
    %18 = vector.multi_reduction <maximumf>, %17, %cst_10 [1] : vector<8x128xf32> to vector<8xf32>
    %19 = vector.shape_cast %18 : vector<8xf32> to vector<8x1xf32>
    %20 = vector.broadcast %19 : vector<8x1xf32> to vector<8x128xf32>
    %21 = arith.subf %17, %20 : vector<8x128xf32>
    %22 = math.exp %21 : vector<8x128xf32>
    %cst_11 = arith.constant dense<0.000000e+00> : vector<8xf32>
    %23 = vector.multi_reduction <add>, %22, %cst_11 [1] : vector<8x128xf32> to vector<8xf32>
    %24 = vector.shape_cast %23 : vector<8xf32> to vector<8x1xf32>
    %25 = tpu.reciprocal %24 {approx = true} : vector<8x1xf32> -> vector<8x1xf32>
    %26 = vector.broadcast %25 : vector<8x1xf32> to vector<8x128xf32>
    %27 = arith.mulf %22, %26 : vector<8x128xf32>
    %c0_12 = arith.constant 0 : index
    %c0_13 = arith.constant 0 : index
    %28 = vector.load %arg3[%c0_12, %c0_13] : memref<8x128xf32, #tpu.memory_space<vmem>>, vector<8x128xf32>
    tpu.vector_store %arg3[%c0_12, %c0_13], %27 {strides = array<i32>} : memref<8x128xf32, #tpu.memory_space<vmem>>, vector<8x128xf32>,
    return
  }
  func.func @transform_0(%arg0: i32) -> (i32, i32) {
    %c0_i32 = arith.constant 0 : i32
    %c0_i32_0 = arith.constant 0 : i32
    return %arg0, %c0_i32 : i32, i32
  }
  func.func @transform_1(%arg0: i32) -> (i32, i32) {
    %c0_i32 = arith.constant 0 : i32
    %c0_i32_0 = arith.constant 0 : i32
    %c0_i32_1 = arith.constant 0 : i32
    return %c0_i32, %c0_i32_0 : i32, i32
  }
  func.func @transform_2(%arg0: i32) -> (i32, i32) {
    %c0_i32 = arith.constant 0 : i32
    %c0_i32_0 = arith.constant 0 : i32
    return %arg0, %c0_i32 : i32, i32
  }
}

</mosaic_0001>

<bundles_post_ra>
// kernel: tpu_custom_call.1
= control target key start
LH: loop header
LB: loop body
LE: loop exit
PB: predicated region body
PF: predicated region fallthrough
CT: control target
= control target key end

     0   :  { %7 = vsyncpa [#allocation3], 0  ;;  %s673_s0 = inlined_call_operand.hbm [shape: f32[8,16], index: 0, kind: input, shape index: {}]   ;;  %s674_s1 = inlined_call_operand.hbm [shape: f32[296,128], index: 1, kind: input, shape index: {}]   ;;  %s675_s2 = inlined_call_operand.hbm [shape: f32[8,128], index: 2, kind: output, shape index: {}]  }
   0x1   :  { %8 = vsyncpa [#allocation6], 0 }
   0x2   :  { %9 = vsyncpa [#allocation4], 0  ;;  %s587_s9 = smov [#allocation2]   ;;  %s588_s11 = smov [#allocation5]  }
   0x3   :  { %s16_s10 = sshll.u32 %s587_s9, 4  ;;  %s25_s12 = sshll.u32 %s588_s11, 4  ;;  %s17_s10 = int_to_ptr.vmem [resolvable:$true] %s16_s10  ;;  %s610_s12 = int_to_ptr.vmem [resolvable:$true] %s25_s12 }
   0x4   :  { %s515_s15 = scalar_lea.hbm %s673_s0, 128 }
   0x5   :  { %p516_p0 = scmp.ne.s32.totalorder %s673_s0, %s515_s15  ;;  %p519_p1 = scmp.lt.u32.totalorder %s515_s15, %s673_s0 }
   0x7   :  { %p521_p2 = pnand %p519_p1, %p516_p0 }
   0x9   :  { %524 = shalt.err (!%p521_p2)
}
   0xa   :  { %s525_s20 = scalar_lea.vmem %s17_s10, 128  ;;  %p530_p4 = scmp.lt.s32.totalorder %s17_s10, %s17_s10 }
   0xb   :  { %p526_p3 = scmp.ne.s32.totalorder %s17_s10, %s525_s20  ;;  %p531_p5 = scmp.lt.s32.totalorder %s525_s20, %s525_s20 }
   0xd   :  { %p532_p6 = por %p531_p5, %p530_p4 }
   0xf   :  { %p533_p7 = pnand %p532_p6, %p526_p3 }
  0x11   :  { %536 = shalt.err (!%p533_p7)
}
  0x12   :  { %19 = dma.hbm_to_vmem [thread:$0]  %s673_s0, 128, %s17_s10, [#allocation3]  }
  0x13   :  { %s537_s25 = scalar_lea.hbm %s674_s1, 4736 }
  0x14   :  { %p538_p8 = scmp.ne.s32.totalorder %s674_s1, %s537_s25  ;;  %p541_p9 = scmp.lt.u32.totalorder %s537_s25, %s674_s1 }
  0x16   :  { %p543_p10 = pnand %p541_p9, %p538_p8 }
  0x18   :  { %546 = shalt.err (!%p543_p10)
}
  0x19   :  { %s547_s30 = scalar_lea.vmem %s610_s12, 4736  ;;  %p552_p12 = scmp.lt.s32.totalorder %s610_s12, %s610_s12 }
  0x1a   :  { %p548_p11 = scmp.ne.s32.totalorder %s610_s12, %s547_s30  ;;  %p553_p13 = scmp.lt.s32.totalorder %s547_s30, %s547_s30 }
  0x1c   :  { %p554_p0 = por %p553_p13, %p552_p12 }
  0x1e   :  { %p555_p1 = pnand %p554_p0, %p548_p11 }
  0x20   :  { %558 = shalt.err (!%p555_p1)
}
  0x21   :  { %s589_s0 = smov 128   ;;  %s590_s3 = smov 8  }
  0x22   :  { %31 = dma.hbm_to_vmem [thread:$0]  %s674_s1, 4736, %s610_s12, [#allocation6], %s589_s0, %s589_s0, %s590_s3  }
  0x23   :  { %581 = dma.done.wait [#allocation3], 128  }
  0x24   :  { %582 = vsyncadd [#allocation3], 4294967168 }
  0x25   :  { %583 = dma.done.wait [#allocation6], 4736  }
  0x26   :  { %584 = vsyncadd [#allocation6], 4294962560  ;;  %v591_v0 = vmov 0.0|0.0   ;;  %vm592_vm0 = vmmov 0   ;;  %v593_v1 = vmov 0.0   ;;  %v39_v2 = vld [vmem:[#allocation5] sm:$0xff] }
  0x27   :  { %448 = vmatprep.subr.bf16.mxu0 %v591_v0  ;;  %375 = vmatprep.mubr.msk.f32.mxu0 %vm592_vm0, %v593_v1  ;;  %v40_v3 = vld [vmem:[#allocation5 + $0x8] sm:$0xff]  ;;  %v42_v5 = vld [vmem:[#allocation5 + $0x18] sm:$0xff]  ;;  %v43_v6 = vld [vmem:[#allocation5 + $0x20] sm:$0xff]  ;;  %vm80_vm1 = vcmask 130048   ;;  %s594_s1 = smov [#allocation7]  }
  0x28   :  { %451 = vmatprep.subr.bf16.mxu1 %v591_v0  ;;  %410 = vmatprep.mubr.msk.f32.mxu1 %vm592_vm0, %v593_v1  ;;  %v449_v4 = vpack.c.bf16 %v40_v3, %v39_v2  ;;  %v44_v7 = vld [vmem:[#allocation5 + $0x28] sm:$0xff]  ;;  %v452_v8 = vpack.c.bf16 %v43_v6, %v42_v5  ;;  %v45_v9 = vld [vmem:[#allocation5 + $0x30] sm:$0xff]  ;;  %v38_v10 = vld [vmem:[#allocation2] sm:$0xff]  ;;  %s320_s6 = sshll.u32 %s594_s1, 4  ;;  %s321_s6 = int_to_ptr.vmem [resolvable:$true] %s320_s6 }
  0x29   :  { %v455_v11 = vpack.c.bf16 %v45_v9, %v44_v7  ;;  %v46_v12 = vld [vmem:[#allocation5 + $0x38] sm:$0xff]  ;;  %v47_v13 = vld [vmem:[#allocation5 + $0x40] sm:$0xff]  ;;  %v48_v15 = vld [vmem:[#allocation5 + $0x48] sm:$0xff]  ;;  %s559_s7 = scalar_lea.vmem %s321_s6, 128  ;;  %p564_p3 = scmp.lt.s32.totalorder %s321_s6, %s321_s6 }
  0x2a   :  { %450 = vmatpush3.bf16.msra.mxu0 %v449_v4  ;;  %453 = vmatpush3.bf16.msra.mxu1 %v452_v8  ;;  %v458_v14 = vpack.c.bf16 %v47_v13, %v46_v12  ;;  %v49_v16 = vld [vmem:[#allocation5 + $0x50] sm:$0xff]  ;;  %v50_v18 = vld [vmem:[#allocation5 + $0x58] sm:$0xff]  ;;  %v51_v19 = vld [vmem:[#allocation5 + $0x60] sm:$0xff]  ;;  %p560_p2 = scmp.ne.s32.totalorder %s321_s6, %s559_s7  ;;  %p565_p4 = scmp.lt.s32.totalorder %s559_s7, %s559_s7 }
  0x2b   :  { %475 = vmatprep.subr.bf16.mxu0 %v591_v0  ;;  %454 = vmatprep.subr.bf16.mxu1 %v591_v0  ;;  %v461_v17 = vpack.c.bf16 %v49_v16, %v48_v15  ;;  %v464_v20 = vpack.c.bf16 %v51_v19, %v50_v18  ;;  %v52_v21 = vld [vmem:[#allocation5 + $0x68] sm:$0xff]  ;;  %v53_v22 = vld [vmem:[#allocation5 + $0x70] sm:$0xff]  ;;  %v54_v24 = vld [vmem:[#allocation5 + $0x78] sm:$0xff] }
  0x2c   :  { %v467_v23 = vpack.c.bf16 %v53_v22, %v52_v21  ;;  %v55_v25 = vld [vmem:[#allocation5 + $0x80] sm:$0xff]  ;;  %v56_v27 = vld [vmem:[#allocation5 + $0x88] sm:$0xff]  ;;  %v57_v28 = vld [vmem:[#allocation5 + $0x90] sm:$0xff]  ;;  %p566_p5 = por %p565_p4, %p564_p3 }
  0x2d   :  { %376 = vmatmul.mubr.msk.f32.vlgmr.msra.gmra.mrb[0].mxu0 %vm80_vm1, %v38_v10  ;;  %v470_v26 = vpack.c.bf16 %v55_v25, %v54_v24  ;;  %v473_v29 = vpack.c.bf16 %v57_v28, %v56_v27  ;;  %v59_v30 = vld [vmem:[#allocation5 + $0xa0] sm:$0xff]  ;;  %v60_v31 = vld [vmem:[#allocation5 + $0xa8] sm:$0xff]  ;;  %v61_v32 = vld [vmem:[#allocation5 + $0xb0] sm:$0xff] }
  0x2e   :  { %445 = vmatprep.mubr.msk.f32.mxu0 %vm592_vm0, %v593_v1  ;;  %456 = vmatpush3.bf16.msra.mxu1 %v455_v11  ;;  %v476_v33 = vpack.c.bf16 %v60_v31, %v59_v30  ;;  %v62_v34 = vld [vmem:[#allocation5 + $0xb8] sm:$0xff]  ;;  %v63_v36 = vld [vmem:[#allocation5 + $0xc0] sm:$0xff]  ;;  %v64_v37 = vld [vmem:[#allocation5 + $0xc8] sm:$0xff]  ;;  %p567_p6 = pnand %p566_p5, %p560_p2 }
  0x2f   :  { %457 = vmatprep.subr.bf16.mxu1 %v591_v0  ;;  %v479_v35 = vpack.c.bf16 %v62_v34, %v61_v32  ;;  %v482_v38 = vpack.c.bf16 %v64_v37, %v63_v36  ;;  %v65_v39 = vld [vmem:[#allocation5 + $0xd0] sm:$0xff]  ;;  %v66_v40 = vld [vmem:[#allocation5 + $0xd8] sm:$0xff]  ;;  %v67_v42 = vld [vmem:[#allocation5 + $0xe0] sm:$0xff] }
  0x30   :  { %477 = vmatpush3.bf16.msra.mxu0 %v476_v33  ;;  %v485_v41 = vpack.c.bf16 %v66_v40, %v65_v39  ;;  %v68_v43 = vld [vmem:[#allocation5 + $0xe8] sm:$0xff]  ;;  %v330_v45 = vld [vmem:[#allocation5 + $0x10] ss:$0 sm:$0xff]  ;;  %v70_v51 = vld [vmem:[#allocation5 + $0xf8] sm:$0xff] }
  0x31   :  { %478 = vmatprep.subr.bf16.mxu0 %v591_v0  ;;  %v488_v44 = vpack.c.bf16 %v68_v43, %v67_v42  ;;  %v69_v50 = vld [vmem:[#allocation5 + $0xf0] sm:$0xff]  ;;  %v71_v53 = vld [vmem:[#allocation5 + $0x100] sm:$0xff]  ;;  %v72_v54 = vld [vmem:[#allocation5 + $0x108] sm:$0xff] }
  0x32   :  { %459 = vmatpush3.bf16.msra.mxu1 %v458_v14  ;;  %v491_v52 = vpack.c.bf16 %v70_v51, %v69_v50  ;;  %v494_v55 = vpack.c.bf16 %v72_v54, %v71_v53  ;;  %v73_v56 = vld [vmem:[#allocation5 + $0x110] sm:$0xff]  ;;  %v74_v57 = vld [vmem:[#allocation5 + $0x118] sm:$0xff]  ;;  %v333_v1 = vld [vmem:[#allocation5 + $0x120] ss:$0 sm:$0xff] }
  0x33   :  { %460 = vmatprep.subr.bf16.mxu1 %v591_v0  ;;  %v497_v58 = vpack.c.bf16 %v74_v57, %v73_v56  ;;  %v332_v59 = vld [vmem:[#allocation5 + $0x98] ss:$0 sm:$0xff] }
  0x34   :  { %480 = vmatpush3.bf16.msra.mxu0 %v479_v35 }
  0x35   :  { %481 = vmatprep.subr.bf16.mxu0 %v591_v0 }
  0x36   :  { %462 = vmatpush3.bf16.msra.mxu1 %v461_v17 }
  0x37   :  { %463 = vmatprep.subr.bf16.mxu1 %v591_v0 }
  0x38   :  { %483 = vmatpush3.bf16.msra.mxu0 %v482_v38 }
  0x39   :  { %484 = vmatprep.subr.bf16.mxu0 %v591_v0 }
  0x3a   :  { %465 = vmatpush3.bf16.msra.mxu1 %v464_v20 }
  0x3b   :  { %466 = vmatprep.subr.bf16.mxu1 %v591_v0 }
  0x3c   :  { %486 = vmatpush3.bf16.msra.mxu0 %v485_v41 }
  0x3d   :  { %487 = vmatprep.subr.bf16.mxu0 %v591_v0 }
  0x3e   :  { %468 = vmatpush3.bf16.msra.mxu1 %v467_v23 }
  0x3f   :  { %469 = vmatprep.subr.bf16.mxu1 %v591_v0 }
  0x40   :  { %489 = vmatpush3.bf16.msra.mxu0 %v488_v44 }
  0x41   :  { %490 = vmatprep.subr.bf16.mxu0 %v591_v0 }
  0x42   :  { %471 = vmatpush3.bf16.msra.mxu1 %v470_v26 }
  0x43   :  { %472 = vmatprep.subr.bf16.mxu1 %v591_v0 }
  0x44   :  { %492 = vmatpush3.bf16.msra.mxu0 %v491_v52 }
  0x45   :  { %493 = vmatprep.subr.bf16.mxu0 %v591_v0 }
  0x46   :  { %474 = vmatpush3.bf16.msra.mxu1 %v473_v29 }
  0x48   :  { %495 = vmatpush3.bf16.msra.mxu0 %v494_v55 }
  0x49   :  { %496 = vmatprep.subr.bf16.mxu0 %v591_v0 }
  0x4c   :  { %498 = vmatpush3.bf16.msra.mxu0 %v497_v58 }
 0x100   :  { %v150_v46 = vpop.f32.mrb[0].mxu0 }
 0x101   :  { %v151_v47 = vadd.f32 %v330_v45, %v150_v46  ;;  %v377_v48 = vpop.f32.mrb[1].mxu0 }
 0x103   :  { %507 = vtanh.f32 %v151_v47 }
 0x10d   :  { %v508_v49 = vpop.eup %507 }
 0x10e   :  { %411 = vmatmul.mubr.f32.vlgmr.msra.gmra.mrb[0].mxu1 %v508_v49 }
 0x1e1   :  { %v225_v60 = vpop.f32.mrb[0].mxu1 }
 0x1e2   :  { %v226_v61 = vadd.f32 %v332_v59, %v225_v60  ;;  %v412_v62 = vpop.f32.mrb[1].mxu1 }
 0x1e4   :  { %509 = vtanh.f32 %v226_v61 }
 0x1ee   :  { %v510_v63 = vpop.eup %509 }
 0x1ef   :  { %446 = vmatmul.mubr.f32.vlgmr.msra.gmra.mrb[2].mxu0 %v510_v63 }
 0x2c2   :  { %v300_v2 = vpop.f32.mrb[2].mxu0 }
 0x2c3   :  { %v301_v3 = vadd.f32 %v333_v1, %v300_v2  ;;  %v447_v4 = vpop.f32.mrb[3].mxu0 }
 0x2c5   :  { %304 = vmax.xlane.f32.xlu0 %v301_v3 }
 0x352   :  { %v305_v5 = vpop.xlane.xlu0 %304 }
 0x353   :  { %v306_v6 = vsub.f32 %v301_v3, %v305_v5 }
 0x355   :  { %v307_v7 = vmul.f32 1.442695, %v306_v6 }
 0x357   :  { %511 = vpow2.f32 %v307_v7 }
 0x361   :  { %v512_v8 = vpop.eup %511 }
 0x362   :  { %309 = vadd.xlane.f32.xlu0 %v512_v8 }
 0x3ef   :  { %v310_v0 = vpop.xlane.xlu0 %309 }
 0x3f0   :  { %513 = vrcp.f32 %v310_v0 }
 0x3fa   :  { %v514_v9 = vpop.eup %513 }
 0x3fb   :  { %v312_v10 = vmul.f32 %v514_v9, %v512_v8 }
 0x3fd   :  { %313 = vst [vmem:[#allocation7] sm:$0xff] %v312_v10 }
 0x3fe   :  { %570 = shalt.err (!%p567_p6)
}
 0x3ff   :  { %s571_s10 = scalar_lea.hbm %s675_s2, 128 }
 0x400   :  { %p572_p7 = scmp.ne.s32.totalorder %s675_s2, %s571_s10  ;;  %p575_p8 = scmp.lt.u32.totalorder %s571_s10, %s675_s2 }
 0x402   :  { %p577_p9 = pnand %p575_p8, %p572_p7 }
 0x404   :  { %580 = shalt.err (!%p577_p9)
}
 0x405   :  { %323 = dma.vmem_to_hbm [thread:$0]  %s321_s6, 128, %s675_s2, [#allocation4]  }
 0x406   :  { %585 = dma.done.wait [#allocation4], 128  }
 0x407   :  { %586 = vsyncadd [#allocation4], 4294967168 }
 0x408   :  { %327 = vsyncpa [#allocation3], 1 }
 0x409   :  { %328 = vsyncpa [#allocation6], 1 }
 0x40a   :  { %329 = vsyncpa [#allocation4], 1 }

</bundles_post_ra>
